<compile_context>
chip_gen: v7x
topology: tpu7x:2x2x1
jax: 0.10.0
libtpu: 0.0.40
codegen_flags: <defaults>
</compile_context>

<pallas_src>
import functools
import math

import jax
import jax.numpy as jnp
from jax.experimental import pallas as pl
from jax.experimental.pallas import tpu as pltpu


# ------------------------------ kernels ------------------------------------ #

def _pe_add_kernel(x_ref, pe_ref, o_ref):
    # eval mode: out = x + pe  (pure elementwise on lane-dense 2D tiles)
    o_ref[...] = x_ref[...] + pe_ref[...].astype(x_ref.dtype)


def _pe_add_dropout_kernel(x_ref, pe_ref, bits_ref, o_ref, *, keep_threshold, scale):
    val = x_ref[...] + pe_ref[...].astype(x_ref.dtype)
    keep = bits_ref[...] >= jnp.uint32(keep_threshold)        # integer-threshold dropout
    scaled = val * jnp.asarray(scale, dtype=val.dtype)
    o_ref[...] = jnp.where(keep, scaled, jnp.zeros((), dtype=val.dtype))


# ------------------------------ buffer ------------------------------------- #

def make_pe(d_model, max_len=5000, dtype=jnp.float32):
    """Sinusoidal positional-encoding buffer, shape [max_len, 1, d_model] (torch layout)."""
    position = jnp.arange(max_len, dtype=jnp.float32)[:, None]                 # [max_len, 1]
    div_term = jnp.exp(jnp.arange(0, d_model, 2, dtype=jnp.float32)
                       * (-math.log(10000.0) / d_model))                       # [d_model/2]
    pe = jnp.zeros((max_len, d_model), dtype=jnp.float32)
    pe = pe.at[:, 0::2].set(jnp.sin(position * div_term))
    pe = pe.at[:, 1::2].set(jnp.cos(position * div_term))
    return pe[:, None, :].astype(dtype)                                        # [max_len, 1, d_model]


# ------------------------------ wrapper ------------------------------------ #

def _choose_tile_s(S, row_bytes, sublane, budget_bytes):
    # Double-buffered pipeline => ~2x the per-step footprint resident in VMEM.
    t = budget_bytes // (2 * row_bytes)
    t = max(sublane, (t // sublane) * sublane)   # sublane-aligned row block
    return S if t >= S else t


def positional_encoding(x, pe, *, p=0.1, training=True, seed=0, tile_s=None,
                        vmem_tile_budget_bytes=8 * 1024 * 1024, donate_x=False):
    """x: [S, B, D]; pe: [max_len, 1, D] with max_len >= S (PyTorch buffer layout)."""
    S, B, D = x.shape
    W = B * D

    # Lane-dense 2D views: last dim (B*D) maps to vector lanes, rows to sublanes.
    x2 = x.reshape(S, W)
    # Broadcast pe over batch and flatten to the same [S, B*D] layout, cast to x.dtype.
    # Constant buffer plumbing; precompute once per (B, D) in a real model.
    pe2 = jnp.tile(pe[:S, 0, :], (1, B)).astype(x.dtype)

    itemsize = jnp.dtype(x.dtype).itemsize
    sublane = 8 if itemsize >= 4 else (16 if itemsize == 2 else 32)

    use_dropout = bool(training) and float(p) > 0.0

    # Per-row VMEM footprint: x in + out + pe (+ uint32 bits when training).
    row_bytes = W * itemsize * 3
    if use_dropout:
        row_bytes += W * 4
    if tile_s is None:
        tile_s = _choose_tile_s(S, row_bytes, sublane, vmem_tile_budget_bytes)
    tile_s = min(int(tile_s), S)

    grid = (pl.cdiv(S, tile_s),)
    row_spec = pl.BlockSpec((tile_s, W), lambda i: (i, 0))

    if use_dropout:
        # keep element iff bits >= p * 2^32  =>  P[keep] = 1 - p
        keep_threshold = min(int(round(float(p) * float(2 ** 32))), 2 ** 32 - 1)
        kernel = functools.partial(_pe_add_dropout_kernel,
                                   keep_threshold=keep_threshold,
                                   scale=1.0 / (1.0 - float(p)))
        # TODO(synk): dropout mask is deterministic per seed (threefry, tiling-invariant)
        # but does not bit-match torch's RNG stream.
        bits = jax.random.bits(jax.random.PRNGKey(seed), (S, W), dtype=jnp.uint32)
        in_specs = [row_spec, row_spec, row_spec]
        args = (x2, pe2, bits)
    else:
        kernel = _pe_add_kernel
        in_specs = [row_spec, row_spec]
        args = (x2, pe2)

    out2 = pl.pallas_call(
        kernel,
        out_shape=jax.ShapeDtypeStruct((S, W), x.dtype),
        grid_spec=pl.GridSpec(grid=grid, in_specs=in_specs, out_specs=row_spec),
        compiler_params=pltpu.CompilerParams(
            dimension_semantics=("parallel",),      # rows shard across v7x's 2 TCs
            vmem_limit_bytes=32 * 1024 * 1024,      # explicit, safe on v5e/v6e/v7x
        ),
        input_output_aliases=({0: 0} if donate_x else {}),  # optional in-place update
    )(*args)
    return out2.reshape(S, B, D)


# ------------------------------ demo --------------------------------------- #

if __name__ == "__main__":
    SEQ, BATCH, D_MODEL = 8, 2, 32
    MAX_LEN = 5000
    P_DROP = 0.1

    key = jax.random.PRNGKey(0)
    x = jax.random.normal(key, (SEQ, BATCH, D_MODEL), dtype=jnp.float32)
    pe = make_pe(D_MODEL, max_len=MAX_LEN)

    ref = x + pe[:SEQ]                                      # broadcast over batch

    # Eval mode (dropout = identity): must match x + pe[:S].
    out_eval = jax.block_until_ready(
        positional_encoding(x, pe, p=P_DROP, training=False))
    assert out_eval.shape == (SEQ, BATCH, D_MODEL)
    assert jnp.allclose(out_eval, ref, atol=1e-6, rtol=1e-6), "eval-mode mismatch"

    # Training mode: surviving elements are (x+pe)/(1-p), dropped elements are 0.
    out_train = jax.block_until_ready(
        positional_encoding(x, pe, p=P_DROP, training=True, seed=0))
    assert out_train.shape == (SEQ, BATCH, D_MODEL)
    scaled = ref / (1.0 - P_DROP)
    ok = jnp.isclose(out_train, scaled, atol=1e-5) | (out_train == 0.0)
    assert bool(jnp.all(ok)), "training-mode dropout values inconsistent"
    drop_frac = float(jnp.mean((out_train == 0.0).astype(jnp.float32)))
    assert drop_frac < 0.5, f"implausible dropout rate {drop_frac}"

    print("KERNEL_OK")
</pallas_src>

<mosaic_0001>
module attributes {stable_mosaic.version = 11 : i64} {
  func.func @_pe_add_kernel(%arg0: i32, %arg1: memref<8x64xf32, #tpu.memory_space<vmem>>, %arg2: memref<8x64xf32, #tpu.memory_space<vmem>>, %arg3: memref<8x64xf32, #tpu.memory_space<vmem>>) attributes {dimension_semantics = [#tpu.dimension_semantics<parallel>], iteration_bounds = array<i64: 1>, scalar_prefetch = 0 : i64, scratch_operands = 0 : i64, tpu.core_type = #tpu.core_type<tc>, window_params = [{transform_indices = @transform_0, window_bounds = array<i64: 8, 64>}, {transform_indices = @transform_1, window_bounds = array<i64: 8, 64>}, {transform_indices = @transform_2, window_bounds = array<i64: 8, 64>}]} {
    %c0 = arith.constant 0 : index
    %c0_0 = arith.constant 0 : index
    %0 = vector.load %arg1[%c0, %c0_0] : memref<8x64xf32, #tpu.memory_space<vmem>>, vector<8x64xf32>
    %c0_1 = arith.constant 0 : index
    %c0_2 = arith.constant 0 : index
    %1 = vector.load %arg2[%c0_1, %c0_2] : memref<8x64xf32, #tpu.memory_space<vmem>>, vector<8x64xf32>
    %2 = arith.addf %0, %1 : vector<8x64xf32>
    %c0_3 = arith.constant 0 : index
    %c0_4 = arith.constant 0 : index
    %3 = vector.load %arg3[%c0_3, %c0_4] : memref<8x64xf32, #tpu.memory_space<vmem>>, vector<8x64xf32>
    tpu.vector_store %arg3[%c0_3, %c0_4], %2 {strides = array<i32>} : memref<8x64xf32, #tpu.memory_space<vmem>>, vector<8x64xf32>,
    return
  }
  func.func @transform_0(%arg0: i32) -> (i32, i32) {
    %c0_i32 = arith.constant 0 : i32
    %c0_i32_0 = arith.constant 0 : i32
    return %arg0, %c0_i32 : i32, i32
  }
  func.func @transform_1(%arg0: i32) -> (i32, i32) {
    %c0_i32 = arith.constant 0 : i32
    %c0_i32_0 = arith.constant 0 : i32
    return %arg0, %c0_i32 : i32, i32
  }
  func.func @transform_2(%arg0: i32) -> (i32, i32) {
    %c0_i32 = arith.constant 0 : i32
    %c0_i32_0 = arith.constant 0 : i32
    return %arg0, %c0_i32 : i32, i32
  }
}

</mosaic_0001>

<bundles_post_ra>
// kernel: tpu_custom_call.1
= control target key start
LH: loop header
LB: loop body
LE: loop exit
PB: predicated region body
PF: predicated region fallthrough
CT: control target
= control target key end

     0   :  { %7 = vsyncpa [#allocation3], 0  ;;  %s186_s0 = inlined_call_operand.hbm [shape: f32[8,64], index: 0, kind: input, shape index: {}]   ;;  %s187_s1 = inlined_call_operand.hbm [shape: f32[8,64], index: 1, kind: input, shape index: {}]   ;;  %s188_s2 = inlined_call_operand.hbm [shape: f32[8,64], index: 2, kind: output, shape index: {}]  }
   0x1   :  { %8 = vsyncpa [#allocation6], 0 }
   0x2   :  { %9 = vsyncpa [#allocation4], 0  ;;  %s132_s9 = smov [#allocation2]   ;;  %s133_s11 = smov [#allocation5]  }
   0x3   :  { %s16_s10 = sshll.u32 %s132_s9, 4  ;;  %s26_s12 = sshll.u32 %s133_s11, 4  ;;  %s17_s10 = int_to_ptr.vmem [resolvable:$true] %s16_s10  ;;  %s27_s12 = int_to_ptr.vmem [resolvable:$true] %s26_s12 }
   0x4   :  { %s60_s15 = scalar_lea.hbm %s186_s0, 128 }
   0x5   :  { %p61_p0 = scmp.ne.s32.totalorder %s186_s0, %s60_s15  ;;  %p64_p1 = scmp.lt.u32.totalorder %s60_s15, %s186_s0 }
   0x7   :  { %p66_p2 = pnand %p64_p1, %p61_p0 }
   0x9   :  { %69 = shalt.err (!%p66_p2)
}
   0xa   :  { %s70_s20 = scalar_lea.vmem %s17_s10, 128  ;;  %p75_p4 = scmp.lt.s32.totalorder %s17_s10, %s17_s10 }
   0xb   :  { %p71_p3 = scmp.ne.s32.totalorder %s17_s10, %s70_s20  ;;  %p76_p5 = scmp.lt.s32.totalorder %s70_s20, %s70_s20 }
   0xd   :  { %p77_p6 = por %p76_p5, %p75_p4 }
   0xf   :  { %p78_p7 = pnand %p77_p6, %p71_p3 }
  0x11   :  { %81 = shalt.err (!%p78_p7)
}
  0x12   :  { %19 = dma.hbm_to_vmem [thread:$0]  %s186_s0, 128, %s17_s10, [#allocation3]  }
  0x13   :  { %s82_s25 = scalar_lea.hbm %s187_s1, 128 }
  0x14   :  { %p83_p8 = scmp.ne.s32.totalorder %s187_s1, %s82_s25  ;;  %p86_p9 = scmp.lt.u32.totalorder %s82_s25, %s187_s1 }
  0x16   :  { %p88_p10 = pnand %p86_p9, %p83_p8 }
  0x18   :  { %91 = shalt.err (!%p88_p10)
}
  0x19   :  { %s92_s30 = scalar_lea.vmem %s27_s12, 128  ;;  %p97_p12 = scmp.lt.s32.totalorder %s27_s12, %s27_s12 }
  0x1a   :  { %p93_p11 = scmp.ne.s32.totalorder %s27_s12, %s92_s30  ;;  %p98_p13 = scmp.lt.s32.totalorder %s92_s30, %s92_s30 }
  0x1c   :  { %p99_p0 = por %p98_p13, %p97_p12 }
  0x1e   :  { %p100_p1 = pnand %p99_p0, %p93_p11 }
  0x20   :  { %103 = shalt.err (!%p100_p1)
}
  0x21   :  { %29 = dma.hbm_to_vmem [thread:$0]  %s187_s1, 128, %s27_s12, [#allocation6]  }
  0x22   :  { %126 = dma.done.wait [#allocation3], 128  }
  0x23   :  { %127 = vsyncadd [#allocation3], 4294967168 }
  0x24   :  { %128 = dma.done.wait [#allocation6], 128  }
  0x25   :  { %129 = vsyncadd [#allocation6], 4294967168  ;;  %s134_s4 = smov [#allocation7]   ;;  %v36_v0 = vld [vmem:[#allocation2] sm:$0xff]  ;;  %v37_v1 = vld [vmem:[#allocation5] sm:$0xff]  ;;  %vm39_vm0 = vcmask 523264  }
  0x26   :  { %s47_s5 = sshll.u32 %s134_s4, 4  ;;  %v38_v2 = vadd.f32 %v37_v1, %v36_v0  ;;  %s48_s5 = int_to_ptr.vmem [resolvable:$true] %s47_s5 }
  0x27   :  { %s104_s6 = scalar_lea.vmem %s48_s5, 128  ;;  %p109_p3 = scmp.lt.s32.totalorder %s48_s5, %s48_s5 }
  0x28   :  { %40 = vst.msk [vmem:[#allocation7] sm:$0xff] %vm39_vm0, %v38_v2  ;;  %p105_p2 = scmp.ne.s32.totalorder %s48_s5, %s104_s6  ;;  %p110_p4 = scmp.lt.s32.totalorder %s104_s6, %s104_s6 }
  0x2a   :  { %p111_p5 = por %p110_p4, %p109_p3 }
  0x2c   :  { %p112_p6 = pnand %p111_p5, %p105_p2 }
  0x2e   :  { %115 = shalt.err (!%p112_p6)
}
  0x2f   :  { %s116_s8 = scalar_lea.hbm %s188_s2, 128 }
  0x30   :  { %p117_p7 = scmp.ne.s32.totalorder %s188_s2, %s116_s8  ;;  %p120_p8 = scmp.lt.u32.totalorder %s116_s8, %s188_s2 }
  0x32   :  { %p122_p9 = pnand %p120_p8, %p117_p7 }
  0x34   :  { %125 = shalt.err (!%p122_p9)
}
  0x35   :  { %50 = dma.vmem_to_hbm [thread:$0]  %s48_s5, 128, %s188_s2, [#allocation4]  }
  0x36   :  { %130 = dma.done.wait [#allocation4], 128  }
  0x37   :  { %131 = vsyncadd [#allocation4], 4294967168 }
  0x38   :  { %54 = vsyncpa [#allocation3], 1 }
  0x39   :  { %55 = vsyncpa [#allocation6], 1 }
  0x3a   :  { %56 = vsyncpa [#allocation4], 1 }

</bundles_post_ra>
